<compile_context>
chip_gen: v7x
topology: tpu7x:2x2x1
jax: 0.10.0
libtpu: 0.0.40
codegen_flags: <defaults>
</compile_context>

<pallas_src>
import functools

import jax
import jax.numpy as jnp
from jax.experimental import pallas as pl
from jax.experimental.pallas import tpu as pltpu

B = 8          # batch rows (multiple of 8 sublanes)
F_IN = 4       # Linear in_features  (fixed by the module: nn.Linear(4, 4))
F_OUT = 4      # Linear out_features


def _mycell2_chunk_kernel(x_ref, wt_ref, b_ref, h0_ref, o_ref, h_carry, g_buf):
    """Process one T_CHUNK slab of timesteps; h carried across chunks in VMEM."""
    c = pl.program_id(0)
    tc, bx, fin = x_ref.shape          # static block shape
    fout = o_ref.shape[-1]

    # Initialize the carried hidden state from h0 on the first chunk only.
    @pl.when(c == 0)
    def _():
        h_carry[...] = h0_ref[...].astype(jnp.float32)

    # ---------------- throughput phase (no dependence on h) -----------------
    xc = x_ref[...].astype(jnp.float32)            # (tc, B, F_IN)
    wt = wt_ref[...].astype(jnp.float32)           # (F_IN, F_OUT), resident
    b = b_ref[...].astype(jnp.float32)             # (1, F_OUT),    resident

    # One matmul for the whole chunk: (tc*B, F_IN) @ (F_IN, F_OUT).
    y2 = jnp.dot(xc.reshape(tc * bx, fin), wt,
                 preferred_element_type=jnp.float32) + b      # (tc*B, F_OUT)
    ys = y2.reshape(tc, bx, fout)                             # (tc, B, F_OUT)

    # Per-timestep decision gate, vectorized over the chunk:
    #   g_t = y_t if sum(y_t) > 0 else -y_t   (as a sign multiply).
    s = jnp.sum(jnp.sum(ys, axis=2, keepdims=True), axis=1, keepdims=True)  # (tc,1,1)
    sgn = jnp.where(s > 0.0, jnp.float32(1.0), jnp.float32(-1.0))
    g_buf[...] = ys * sgn                                     # staged in VMEM

    # ---------------- serial recurrence: only add + tanh per step -----------
    unroll = True if tc <= 64 else 8

    def step(t, h):
        nh = jnp.tanh(g_buf[t] + h)                # EUP tanh + VPU add only
        o_ref[t] = nh.astype(o_ref.dtype)
        return nh

    h_carry[...] = jax.lax.fori_loop(0, tc, step, h_carry[...], unroll=unroll)


def mycell2_sequence(xs, h0, weight, bias, *, t_chunk=32):
    """Run MyCell2 over a sequence.

    xs: (T, B, F_IN), h0: (B, F_OUT), weight: (F_OUT, F_IN), bias: (F_OUT,).
    Returns new_h for every step, shape (T, B, F_OUT).
    """
    T, bx, fin = xs.shape
    fout = weight.shape[0]

    tc = max(1, min(int(t_chunk), T))
    n_chunks = pl.cdiv(T, tc)
    Tp = n_chunks * tc
    if Tp != T:
        # Pad the tail; padded steps run after all real steps, results sliced off.
        xs = jnp.pad(xs, ((0, Tp - T), (0, 0), (0, 0)))

    wt = weight.T                     # one-time 4x4 transpose (wrapper side)
    b2 = bias.reshape(1, fout)        # metadata view

    cost = pl.CostEstimate(
        flops=int(Tp * (2 * bx * fin * fout + 4 * bx * fout)),
        transcendentals=int(Tp * bx * fout),
        bytes_accessed=int(
            4 * (Tp * bx * fin + Tp * bx * fout)        # streamed x / out
            + 4 * (fin * fout + fout + bx * fout)       # resident params + h0
        ),
    )

    out = pl.pallas_call(
        _mycell2_chunk_kernel,
        out_shape=jax.ShapeDtypeStruct((Tp, bx, fout), xs.dtype),
        grid=(n_chunks,),
        in_specs=[
            # x: a (tc, B, F_IN) slab per grid step.
            pl.BlockSpec((tc, bx, fin), lambda c: (c, 0, 0)),
            # weight^T / bias / h0: same block every step -> VMEM resident.
            pl.BlockSpec((fin, fout), lambda c: (0, 0)),
            pl.BlockSpec((1, fout), lambda c: (0, 0)),
            pl.BlockSpec((bx, fout), lambda c: (0, 0)),
        ],
        out_specs=pl.BlockSpec((tc, bx, fout), lambda c: (c, 0, 0)),
        scratch_shapes=[
            pltpu.VMEM((bx, fout), jnp.float32),        # carried hidden state
            pltpu.VMEM((tc, bx, fout), jnp.float32),    # staged gate values g_t
        ],
        compiler_params=pltpu.CompilerParams(
            dimension_semantics=("arbitrary",),   # time carries state (serial)
        ),
        cost_estimate=cost,
    )(xs, wt, b2, h0)

    return out[:T] if Tp != T else out


def mycell2_forward(x, h, weight, bias):
    """Single-step module forward: returns (new_h, new_h), matching MyCell2.

    Note: a standalone T=1 pallas_call is launch-overhead bound; prefer the
    sequence entry point with real T for benchmarking.
    """
    new_hs = mycell2_sequence(x[None], h, weight, bias, t_chunk=1)
    new_h = new_hs[0]
    return new_h, new_h


# ----------------------------- references -----------------------------------

def _reference_step(x, h, weight, bias):
    y = x @ weight.T + bias
    g = jnp.where(jnp.sum(y) > 0.0, y, -y)
    return jnp.tanh(g + h)


def _reference_sequence(xs, h0, weight, bias):
    def step(h, x):
        nh = _reference_step(x, h, weight, bias)
        return nh, nh
    _, hs = jax.lax.scan(step, h0, xs)
    return hs


if __name__ == "__main__":
    key = jax.random.PRNGKey(0)
    kx, kh, kw, kb, ks = jax.random.split(key, 5)

    # Deterministic parameter init (synthetic, matching nn.Linear(4, 4) shapes).
    weight = jax.random.uniform(kw, (F_OUT, F_IN), jnp.float32,
                                minval=-0.5, maxval=0.5)
    bias = jax.random.uniform(kb, (F_OUT,), jnp.float32,
                              minval=-0.5, maxval=0.5)

    x = jax.random.uniform(kx, (B, F_IN), jnp.float32)
    h = jax.random.uniform(kh, (B, F_OUT), jnp.float32)

    # Single-step forward (module semantics).
    new_h, new_h2 = mycell2_forward(x, h, weight, bias)
    jax.block_until_ready(new_h)
    ref = _reference_step(x, h, weight, bias)
    assert jnp.allclose(new_h, ref, atol=1e-5, rtol=1e-5), "single-step mismatch"
    assert jnp.array_equal(new_h, new_h2)

    # Multi-step path: chunked time axis, T not divisible by the chunk size
    # (exercises tail padding); params / h stay resident across chunks.
    T = 37
    xs = jax.random.uniform(ks, (T, B, F_IN), jnp.float32)
    hs = mycell2_sequence(xs, h, weight, bias, t_chunk=16)
    jax.block_until_ready(hs)
    hs_ref = _reference_sequence(xs, h, weight, bias)
    assert jnp.allclose(hs, hs_ref, atol=1e-4, rtol=1e-4), "sequence mismatch"

    print("KERNEL_OK")
</pallas_src>

<mosaic_0001>
module attributes {stable_mosaic.version = 11 : i64} {
  func.func @_mycell2_chunk_kernel(%arg0: i32, %arg1: memref<1x8x4xf32, #tpu.memory_space<vmem>>, %arg2: memref<4x4xf32, #tpu.memory_space<vmem>>, %arg3: memref<1x4xf32, #tpu.memory_space<vmem>>, %arg4: memref<8x4xf32, #tpu.memory_space<vmem>>, %arg5: memref<1x8x4xf32, #tpu.memory_space<vmem>>, %arg6: memref<8x4xf32, #tpu.memory_space<vmem>>, %arg7: memref<1x8x4xf32, #tpu.memory_space<vmem>>) attributes {dimension_semantics = [#tpu.dimension_semantics<arbitrary>], iteration_bounds = array<i64: 1>, scalar_prefetch = 0 : i64, scratch_operands = 2 : i64, tpu.core_type = #tpu.core_type<tc>, window_params = [{transform_indices = @transform_0, window_bounds = array<i64: 1, 8, 4>}, {pipeline_mode = #tpu.pipeline_mode<synchronous>, transform_indices = @transform_1, window_bounds = array<i64: 4, 4>}, {pipeline_mode = #tpu.pipeline_mode<synchronous>, transform_indices = @transform_2, window_bounds = array<i64: 1, 4>}, {pipeline_mode = #tpu.pipeline_mode<synchronous>, transform_indices = @transform_3, window_bounds = array<i64: 8, 4>}, {transform_indices = @transform_4, window_bounds = array<i64: 1, 8, 4>}]} {
    %c0_i32 = arith.constant 0 : i32
    %0 = arith.cmpi eq, %arg0, %c0_i32 : i32
    %1 = arith.extui %0 : i1 to i32
    %c0_i32_0 = arith.constant 0 : i32
    %2 = arith.cmpi ne, %1, %c0_i32_0 : i32
    scf.if %2 {
      %c0_24 = arith.constant 0 : index
      %c0_25 = arith.constant 0 : index
      %34 = vector.load %arg4[%c0_24, %c0_25] : memref<8x4xf32, #tpu.memory_space<vmem>>, vector<8x4xf32>
      %c0_26 = arith.constant 0 : index
      %c0_27 = arith.constant 0 : index
      %35 = vector.load %arg6[%c0_26, %c0_27] : memref<8x4xf32, #tpu.memory_space<vmem>>, vector<8x4xf32>
      tpu.vector_store %arg6[%c0_26, %c0_27], %34 {strides = array<i32>} : memref<8x4xf32, #tpu.memory_space<vmem>>, vector<8x4xf32>,
    } else {
    }
    %c0 = arith.constant 0 : index
    %c0_1 = arith.constant 0 : index
    %c0_2 = arith.constant 0 : index
    %3 = vector.load %arg1[%c0, %c0_1, %c0_2] : memref<1x8x4xf32, #tpu.memory_space<vmem>>, vector<1x8x4xf32>
    %c0_3 = arith.constant 0 : index
    %c0_4 = arith.constant 0 : index
    %4 = vector.load %arg2[%c0_3, %c0_4] : memref<4x4xf32, #tpu.memory_space<vmem>>, vector<4x4xf32>
    %c0_5 = arith.constant 0 : index
    %c0_6 = arith.constant 0 : index
    %5 = vector.load %arg3[%c0_5, %c0_6] : memref<1x4xf32, #tpu.memory_space<vmem>>, vector<1x4xf32>
    %6 = vector.shape_cast %3 : vector<1x8x4xf32> to vector<8x4xf32>
    %cst = arith.constant dense<0.000000e+00> : vector<8x4xf32>
    %7 = tpu.matmul %6, %4, %cst {dimension_numbers = #tpu.dot_dimension_numbers<[1], [0], [0], [1], [0, 0, 1, 1], [], []>} : vector<8x4xf32>, vector<4x4xf32>, vector<8x4xf32> -> vector<8x4xf32>
    %8 = vector.broadcast %5 : vector<1x4xf32> to vector<8x4xf32>
    %9 = arith.addf %7, %8 : vector<8x4xf32>
    %10 = vector.shape_cast %9 : vector<8x4xf32> to vector<1x8x4xf32>
    %cst_7 = arith.constant dense<0.000000e+00> : vector<1x8xf32>
    %11 = vector.multi_reduction <add>, %10, %cst_7 [2] : vector<1x8x4xf32> to vector<1x8xf32>
    %12 = vector.shape_cast %11 : vector<1x8xf32> to vector<1x8x1xf32>
    %cst_8 = arith.constant dense<0.000000e+00> : vector<1x1xf32>
    %13 = vector.multi_reduction <add>, %12, %cst_8 [1] : vector<1x8x1xf32> to vector<1x1xf32>
    %14 = vector.shape_cast %13 : vector<1x1xf32> to vector<1x1x1xf32>
    %cst_9 = arith.constant 0.000000e+00 : f32
    %15 = vector.broadcast %cst_9 : f32 to vector<1x1x1xf32>
    %16 = arith.cmpf ogt, %14, %15 : vector<1x1x1xf32>
    %cst_10 = arith.constant 1.000000e+00 : f32
    %cst_11 = arith.constant -1.000000e+00 : f32
    %17 = vector.broadcast %cst_10 : f32 to vector<1x1x1xf32>
    %18 = vector.broadcast %cst_11 : f32 to vector<1x1x1xf32>
    %19 = arith.select %16, %17, %18 : vector<1x1x1xi1>, vector<1x1x1xf32>
    %20 = vector.broadcast %19 : vector<1x1x1xf32> to vector<1x8x4xf32>
    %21 = arith.mulf %10, %20 : vector<1x8x4xf32>
    %c0_12 = arith.constant 0 : index
    %c0_13 = arith.constant 0 : index
    %c0_14 = arith.constant 0 : index
    %22 = vector.load %arg7[%c0_12, %c0_13, %c0_14] : memref<1x8x4xf32, #tpu.memory_space<vmem>>, vector<1x8x4xf32>
    tpu.vector_store %arg7[%c0_12, %c0_13, %c0_14], %21 {strides = array<i32>} : memref<1x8x4xf32, #tpu.memory_space<vmem>>, vector<1x8x4xf32>,
    %c0_15 = arith.constant 0 : index
    %c0_16 = arith.constant 0 : index
    %23 = vector.load %arg6[%c0_15, %c0_16] : memref<8x4xf32, #tpu.memory_space<vmem>>, vector<8x4xf32>
    %c0_i32_17 = arith.constant 0 : i32
    %24 = arith.index_cast %c0_i32_17 : i32 to index
    %c0_18 = arith.constant 0 : index
    %c0_19 = arith.constant 0 : index
    %25 = vector.load %arg7[%24, %c0_18, %c0_19] : memref<1x8x4xf32, #tpu.memory_space<vmem>>, vector<1x8x4xf32>
    %26 = vector.shape_cast %25 : vector<1x8x4xf32> to vector<8x4xf32>
    %27 = arith.addf %26, %23 : vector<8x4xf32>
    %28 = math.tanh %27 : vector<8x4xf32>
    %29 = arith.index_cast %c0_i32_17 : i32 to index
    %c0_20 = arith.constant 0 : index
    %c0_21 = arith.constant 0 : index
    %30 = vector.load %arg5[%29, %c0_20, %c0_21] : memref<1x8x4xf32, #tpu.memory_space<vmem>>, vector<1x8x4xf32>
    %31 = vector.shape_cast %30 : vector<1x8x4xf32> to vector<8x4xf32>
    %32 = vector.shape_cast %28 : vector<8x4xf32> to vector<1x8x4xf32>
    tpu.vector_store %arg5[%29, %c0_20, %c0_21], %32 {strides = array<i32>} : memref<1x8x4xf32, #tpu.memory_space<vmem>>, vector<1x8x4xf32>,
    %c1_i32 = arith.constant 1 : i32
    %c0_22 = arith.constant 0 : index
    %c0_23 = arith.constant 0 : index
    %33 = vector.load %arg6[%c0_22, %c0_23] : memref<8x4xf32, #tpu.memory_space<vmem>>, vector<8x4xf32>
    tpu.vector_store %arg6[%c0_22, %c0_23], %28 {strides = array<i32>} : memref<8x4xf32, #tpu.memory_space<vmem>>, vector<8x4xf32>,
    return
  }
  func.func @transform_0(%arg0: i32) -> (i32, i32, i32) {
    %c0_i32 = arith.constant 0 : i32
    %c0_i32_0 = arith.constant 0 : i32
    %c0_i32_1 = arith.constant 0 : i32
    return %arg0, %c0_i32, %c0_i32_0 : i32, i32, i32
  }
  func.func @transform_1(%arg0: i32) -> (i32, i32) {
    %c0_i32 = arith.constant 0 : i32
    %c0_i32_0 = arith.constant 0 : i32
    %c0_i32_1 = arith.constant 0 : i32
    return %c0_i32, %c0_i32_0 : i32, i32
  }
  func.func @transform_2(%arg0: i32) -> (i32, i32) {
    %c0_i32 = arith.constant 0 : i32
    %c0_i32_0 = arith.constant 0 : i32
    %c0_i32_1 = arith.constant 0 : i32
    return %c0_i32, %c0_i32_0 : i32, i32
  }
  func.func @transform_3(%arg0: i32) -> (i32, i32) {
    %c0_i32 = arith.constant 0 : i32
    %c0_i32_0 = arith.constant 0 : i32
    %c0_i32_1 = arith.constant 0 : i32
    return %c0_i32, %c0_i32_0 : i32, i32
  }
  func.func @transform_4(%arg0: i32) -> (i32, i32, i32) {
    %c0_i32 = arith.constant 0 : i32
    %c0_i32_0 = arith.constant 0 : i32
    %c0_i32_1 = arith.constant 0 : i32
    return %arg0, %c0_i32, %c0_i32_0 : i32, i32, i32
  }
}

</mosaic_0001>

<bundles_post_ra>
// kernel: tpu_custom_call.1
= control target key start
LH: loop header
LB: loop body
LE: loop exit
PB: predicated region body
PF: predicated region fallthrough
CT: control target
= control target key end

     0   :  { %vm37_vm0 = vcmask 1043456   ;;  %vm22_vm1 = vcmask 31744   ;;  %v149_v0 = vmov 0.0   ;;  %vm150_vm2 = vmmov 0   ;;  %s198_s1 = inlined_call_operand.vmem [shape: f32[4,4], index: 1, kind: input, shape index: {}]   ;;  %s199_s0 = inlined_call_operand.vmem [shape: f32[1,8,4], index: 0, kind: input, shape index: {}]   ;;  %s200_s3 = inlined_call_operand.vmem [shape: f32[8,4], index: 3, kind: input, shape index: {}]   ;;  %s201_s2 = inlined_call_operand.vmem [shape: f32[1,4], index: 2, kind: input, shape index: {}]   ;;  %s202_s4 = inlined_call_operand.vmem [shape: f32[1,8,4], index: 4, kind: output, shape index: {}]  }
   0x1   :  { %139 = vmatprep.subr.mxu0 %v149_v0  ;;  %v25_v1 = vld [vmem:[%s198_s1] sm:$0xf]  ;;  %141 = vmatprep.mubr.msk.f32.mxu0 %vm150_vm2, %v149_v0  ;;  %v151_v16 = vmov -1.0  }
   0x2   :  { %v21_v2 = vld [vmem:[%s200_s3] sm:$0xff]  ;;  %140 = vmatpush3.msk.msra.mxu0 %vm37_vm0, %v25_v1 }
   0x3   :  { %v24_v3 = vld [vmem:[%s199_s0] sm:$0xff]  ;;  %23 = vst.msk [vmem:[#allocation2] sm:$0xff] %vm22_vm1, %v21_v2 }
   0x4   :  { %142 = vmatmul.mubr.msk.f32.vlgmr.msra.gmra.mrb[0].mxu0 %vm22_vm1, %v24_v3  ;;  %v134_v4 = vld [vmem:[%s201_s2] ss:$0 sm:$0xff] }
   0xa   :  { %v124_v19 = vld [vmem:[#allocation2] sm:$0xff] }
  0xd7   :  { %v107_v5 = vpop.f32.mrb[0].mxu0 }
  0xd8   :  { %v108_v6 = vadd.f32 %v134_v4, %v107_v5  ;;  %v143_v7 = vpop.f32.mrb[1].mxu0 }
  0xda   :  { %v111_v8 = vsel %vm22_vm1, %v108_v6, 0.0 }
  0xdb   :  { %112 = vadd.xlane.f32.xlu0 %v111_v8 }
 0x168   :  { %v113_v9 = vpop.xlane.xlu0 %112 }
 0x169   :  { %v114_v10 = vrot.slane %v113_v9, 4 }
 0x16b   :  { %v115_v11 = vadd.f32 %v114_v10, %v113_v9 }
 0x16d   :  { %v116_v12 = vrot.slane %v115_v11, 2 }
 0x16f   :  { %v117_v13 = vadd.f32 %v116_v12, %v115_v11 }
 0x171   :  { %v118_v14 = vrot.slane %v117_v13, 1 }
 0x173   :  { %v119_v15 = vadd.f32 %v118_v14, %v117_v13 }
 0x175   :  { %vm120_vm3 = vcmp.gt.f32.partialorder %v119_v15, 0.0 }
 0x176   :  { %v121_v17 = vsel %vm120_vm3, 1.0, %v151_v16 }
 0x177   :  { %v122_v18 = vmul.f32 %v121_v17, %v108_v6 }
 0x179   :  { %123 = vst.msk [vmem:[#allocation3] sm:$0xff] %vm22_vm1, %v122_v18 }
 0x180   :  { %v125_v20 = vld [vmem:[#allocation3] sm:$0xff] }
 0x181   :  { %v126_v21 = vadd.f32 %v125_v20, %v124_v19 }
 0x183   :  { %147 = vtanh.f32 %v126_v21 }
 0x18d   :  { %v148_v22 = vpop.eup %147 }
 0x18e   :  { %128 = vst.msk [vmem:[%s202_s4] sm:$0xff] %vm22_vm1, %v148_v22  ;;  %129 = vst.msk [vmem:[#allocation2] sm:$0xff] %vm22_vm1, %v148_v22 }

</bundles_post_ra>
